<compile_context>
chip_gen: v6e
topology: v6e:2x2x1
jax: 0.10.0
libtpu: 0.0.40
codegen_flags: <defaults>
</compile_context>

<pallas_src>
from functools import partial

import jax
import jax.numpy as jnp
from jax.experimental import pallas as pl
from jax.experimental.pallas import tpu as pltpu


def _round_up(x, m):
    return ((x + m - 1) // m) * m


# ----------------------------------------------------------------------------
# Pallas kernels: tiled (M,K)x(K,N) matmul with fused bias + activation.
# ----------------------------------------------------------------------------
def _apply_act(x, activation):
    if activation == "leaky_relu":
        return jnp.where(x >= 0, x, 0.2 * x)
    if activation == "relu":
        return jnp.maximum(x, 0.0)
    if activation == "tanh":
        return jnp.tanh(x)
    return x


def _matmul_kernel_single_k(a_ref, w_ref, b_ref, o_ref, *, activation):
    # Whole K fits in one tile: no scratch accumulator, no pl.when.
    acc = jnp.dot(a_ref[...], w_ref[...], preferred_element_type=jnp.float32)
    o_ref[...] = _apply_act(acc + b_ref[...], activation).astype(o_ref.dtype)


def _matmul_kernel_acc(a_ref, w_ref, b_ref, o_ref, acc_ref, *, activation):
    # General fallback: K-reduction accumulator in VMEM scratch.
    @pl.when(pl.program_id(2) == 0)
    def _():
        acc_ref[...] = jnp.zeros_like(acc_ref)

    acc_ref[...] += jnp.dot(a_ref[...], w_ref[...],
                            preferred_element_type=jnp.float32)

    @pl.when(pl.program_id(2) == pl.num_programs(2) - 1)
    def _():
        acc = acc_ref[...] + b_ref[...]
        o_ref[...] = _apply_act(acc, activation).astype(o_ref.dtype)


def matmul_bias_act(a, w_p, b_p, activation, out_dtype, n_real,
                    tm_cap=512, tn_cap=512, tk_cap=512):
    """a: (M, K) activations; w_p: (Kp0, Np0) pre-packed bf16 weight (128-padded);
    b_p: (1, Np0) f32 bias. Returns act(a @ w + b)[:M, :n_real] as out_dtype."""
    M, K = a.shape
    Kp0, Np0 = w_p.shape
    assert K <= Kp0 and b_p.shape == (1, Np0)

    Mp = _round_up(M, 16)                      # bf16 sublane packing
    tm = min(Mp, tm_cap)
    # Expose >= 2 parallel M blocks when there is enough work (v7x: 2 TCs).
    if Mp >= 32 and Mp // tm < 2:
        tm = _round_up((Mp + 1) // 2, 16)
    Mp = _round_up(Mp, tm)

    tn = min(Np0, tn_cap)
    Np = _round_up(Np0, tn)
    tk = min(Kp0, tk_cap)
    Kp = _round_up(Kp0, tk)

    a_p = jnp.pad(a.astype(jnp.bfloat16), ((0, Mp - M), (0, Kp - K)))
    if (Kp, Np) != (Kp0, Np0):                 # only for very large configs
        w_p = jnp.pad(w_p, ((0, Kp - Kp0), (0, Np - Np0)))
        b_p = jnp.pad(b_p, ((0, 0), (0, Np - Np0)))

    nk = Kp // tk
    if nk == 1:
        out = pl.pallas_call(
            partial(_matmul_kernel_single_k, activation=activation),
            out_shape=jax.ShapeDtypeStruct((Mp, Np), out_dtype),
            grid_spec=pltpu.PrefetchScalarGridSpec(
                num_scalar_prefetch=0,
                grid=(Mp // tm, Np // tn),
                in_specs=[
                    pl.BlockSpec((tm, Kp), lambda i, j: (i, 0)),
                    pl.BlockSpec((Kp, tn), lambda i, j: (0, j)),
                    pl.BlockSpec((1, tn), lambda i, j: (0, j)),
                ],
                out_specs=pl.BlockSpec((tm, tn), lambda i, j: (i, j)),
            ),
            compiler_params=pltpu.CompilerParams(
                dimension_semantics=("parallel", "parallel")),
        )(a_p, w_p, b_p)
    else:
        out = pl.pallas_call(
            partial(_matmul_kernel_acc, activation=activation),
            out_shape=jax.ShapeDtypeStruct((Mp, Np), out_dtype),
            grid_spec=pltpu.PrefetchScalarGridSpec(
                num_scalar_prefetch=0,
                grid=(Mp // tm, Np // tn, nk),
                in_specs=[
                    pl.BlockSpec((tm, tk), lambda i, j, k: (i, k)),
                    pl.BlockSpec((tk, tn), lambda i, j, k: (k, j)),
                    pl.BlockSpec((1, tn), lambda i, j, k: (0, j)),
                ],
                out_specs=pl.BlockSpec((tm, tn), lambda i, j, k: (i, j)),
                scratch_shapes=[pltpu.VMEM((tm, tn), jnp.float32)],
            ),
            compiler_params=pltpu.CompilerParams(
                dimension_semantics=("parallel", "parallel", "arbitrary")),
        )(a_p, w_p, b_p)
    return out[:M, :n_real]


# ----------------------------------------------------------------------------
# One-time weight packing (done outside the per-forward critical path)
# ----------------------------------------------------------------------------
def _pad_wb(w_mat, b_vec):
    K, N = w_mat.shape
    Kp, Np = _round_up(K, 128), _round_up(N, 128)
    w = jnp.pad(w_mat.astype(jnp.float32), ((0, Kp - K), (0, Np - N)))
    b = jnp.pad(b_vec.astype(jnp.float32), (0, Np - N)).reshape(1, Np)
    return {"w": w.astype(jnp.bfloat16), "b": b}


def _pack_conv_weight(weight):
    # PyTorch Conv2d weight (C_out, C_in, k, k) -> (k*k*C_in, C_out),
    # K ordering (kh, kw, C_in) to match the im2col tap/channel ordering.
    C_out, C_in, k, _ = weight.shape
    return weight.transpose(2, 3, 1, 0).reshape(k * k * C_in, C_out)


def _pack_convT_weight(weight, bias):
    # PyTorch ConvTranspose2d weight (C_in, C_out, 4, 4), stride=2, pad=1.
    # Sub-pixel decomposition, all 4 phases packed along N:
    #   out[2i+rh, 2j+rw] = sum over 3x3 window taps (iw, jw) of
    #       x_pad[i+iw, j+jw] * W[:, :, 3-2*iw+rh, 3-2*jw+rw]
    #   (only taps with iw-rh, jw-rw in {0,1} contribute; others are zero).
    C_in, C_out, k, k2 = weight.shape
    assert k == 4 and k2 == 4, "sub-pixel decomposition hard-coded for k=4,s=2,p=1"
    w_pack = jnp.zeros((3, 3, C_in, 2, 2, C_out), jnp.float32)
    for rh in range(2):
        for rw in range(2):
            for dh in range(2):
                for dw in range(2):
                    iw, jw = rh + dh, rw + dw
                    kh, kw = 3 - 2 * iw + rh, 3 - 2 * jw + rw
                    w_pack = w_pack.at[iw, jw, :, rh, rw, :].set(weight[:, :, kh, kw])
    w_mat = w_pack.reshape(9 * C_in, 4 * C_out)   # K = (iw, jw, ci); N = (rh, rw, co)
    b_vec = jnp.tile(bias, 4)
    return w_mat, b_vec


def prepare_params(params):
    """Pack / pad / cast all weights once. Returns (packed arrays, static meta)."""
    packed, meta = {}, {}
    for i in (1, 2, 3):
        w, b = params[f"enc_w{i}"], params[f"enc_b{i}"]
        C_out, _, k, _ = w.shape
        packed[f"enc{i}"] = _pad_wb(_pack_conv_weight(w), b)
        meta[f"enc{i}"] = dict(cout=int(C_out), k=int(k), stride=2, pad=1)
    for i in (1, 2, 3):
        w, b = params[f"dec_w{i}"], params[f"dec_b{i}"]
        C_out = int(w.shape[1])
        w_mat, b_vec = _pack_convT_weight(w, b)
        packed[f"dec{i}"] = _pad_wb(w_mat, b_vec)
        meta[f"dec{i}"] = dict(cout=C_out)
    return packed, meta


# ----------------------------------------------------------------------------
# NHWC conv / transposed-conv built on the Pallas matmul
# ----------------------------------------------------------------------------
def _im2col_nhwc(x, k, stride, pad):
    """x: (B,H,W,C) -> patches (B*Ho*Wo, k*k*C). K ordering (kh, kw, C)."""
    B, H, W, C = x.shape
    xp = jnp.pad(x, ((0, 0), (pad, pad), (pad, pad), (0, 0)))
    Ho = (H + 2 * pad - k) // stride + 1
    Wo = (W + 2 * pad - k) // stride + 1
    cols = []
    for i in range(k):
        for j in range(k):
            cols.append(xp[:, i:i + stride * Ho:stride, j:j + stride * Wo:stride, :])
    patches = jnp.concatenate(cols, axis=-1).reshape(B * Ho * Wo, k * k * C)
    return patches, Ho, Wo


def conv2d_packed(x, layer, m, activation, out_dtype):
    B = x.shape[0]
    patches, Ho, Wo = _im2col_nhwc(x, m["k"], m["stride"], m["pad"])
    y = matmul_bias_act(patches, layer["w"], layer["b"], activation, out_dtype,
                        n_real=m["cout"])
    return y.reshape(B, Ho, Wo, m["cout"])


def conv_transpose2d_packed(x, layer, m, activation, out_dtype):
    """ConvTranspose2d (k=4, s=2, p=1): one 3x3-window im2col + ONE matmul
    against the phase-packed weight, then interleave the 4 phases."""
    B, H, W, C_in = x.shape
    C_out = m["cout"]
    xp = jnp.pad(x, ((0, 0), (1, 1), (1, 1), (0, 0)))
    cols = [xp[:, i:i + H, j:j + W, :] for i in range(3) for j in range(3)]
    patches = jnp.concatenate(cols, axis=-1).reshape(B * H * W, 9 * C_in)
    y = matmul_bias_act(patches, layer["w"], layer["b"], activation, out_dtype,
                        n_real=4 * C_out)
    y = y.reshape(B, H, W, 2, 2, C_out)            # (b, i, j, rh, rw, co)
    y = jnp.transpose(y, (0, 1, 3, 2, 4, 5))       # (b, i, rh, j, rw, co)
    return y.reshape(B, 2 * H, 2 * W, C_out)


def _concat_attrs_nhwc(h, attrs):
    # TODO(synk): the attrs contribution could be folded into the matmul as a
    # low-rank epilogue term (needs a border correction for the spatial pad).
    B, H, W, _ = h.shape
    A = attrs.shape[1]
    a = jnp.broadcast_to(attrs[:, None, None, :].astype(h.dtype), (B, H, W, A))
    return jnp.concatenate([h, a], axis=-1)


# ----------------------------------------------------------------------------
# FaderNetwork forward (NHWC internally, NCHW at the boundary)
# ----------------------------------------------------------------------------
def fader_network_forward(packed, x, attributes, *, meta):
    x_nhwc = jnp.transpose(x, (0, 2, 3, 1))

    h = conv2d_packed(x_nhwc, packed["enc1"], meta["enc1"], "leaky_relu", jnp.bfloat16)
    h = conv2d_packed(h, packed["enc2"], meta["enc2"], "leaky_relu", jnp.bfloat16)
    latent = conv2d_packed(h, packed["enc3"], meta["enc3"], "leaky_relu", jnp.float32)

    h = _concat_attrs_nhwc(latent, attributes)
    h = conv_transpose2d_packed(h, packed["dec1"], meta["dec1"], "relu", jnp.bfloat16)
    h = _concat_attrs_nhwc(h, attributes)
    h = conv_transpose2d_packed(h, packed["dec2"], meta["dec2"], "relu", jnp.bfloat16)
    h = _concat_attrs_nhwc(h, attributes)
    recon = conv_transpose2d_packed(h, packed["dec3"], meta["dec3"], "tanh", jnp.float32)

    return jnp.transpose(latent, (0, 3, 1, 2)), jnp.transpose(recon, (0, 3, 1, 2))


# ----------------------------------------------------------------------------
# Pure-JAX (XLA) reference for numerical sanity check
# ----------------------------------------------------------------------------
def _ref_forward(params, x, attrs):
    def conv(x, w, b, s, p):
        y = jax.lax.conv_general_dilated(
            x, w, (s, s), [(p, p), (p, p)],
            dimension_numbers=("NCHW", "OIHW", "NCHW"))
        return y + b[None, :, None, None]

    def convT(x, w, b, s, p):
        k = w.shape[2]
        w_eq = jnp.flip(w, (2, 3)).transpose(1, 0, 2, 3)
        y = jax.lax.conv_general_dilated(
            x, w_eq, (1, 1), [(k - 1 - p, k - 1 - p)] * 2,
            lhs_dilation=(s, s),
            dimension_numbers=("NCHW", "OIHW", "NCHW"))
        return y + b[None, :, None, None]

    def cat(h, a):
        B, _, H, W = h.shape
        A = a.shape[1]
        return jnp.concatenate(
            [h, jnp.broadcast_to(a[:, :, None, None], (B, A, H, W))], axis=1)

    lrelu = lambda v: jnp.where(v >= 0, v, 0.2 * v)
    h = lrelu(conv(x, params["enc_w1"], params["enc_b1"], 2, 1))
    h = lrelu(conv(h, params["enc_w2"], params["enc_b2"], 2, 1))
    latent = lrelu(conv(h, params["enc_w3"], params["enc_b3"], 2, 1))
    h = jax.nn.relu(convT(cat(latent, attrs), params["dec_w1"], params["dec_b1"], 2, 1))
    h = jax.nn.relu(convT(cat(h, attrs), params["dec_w2"], params["dec_b2"], 2, 1))
    recon = jnp.tanh(convT(cat(h, attrs), params["dec_w3"], params["dec_b3"], 2, 1))
    return latent, recon


# ----------------------------------------------------------------------------
# Deterministic parameter initialization
# ----------------------------------------------------------------------------
def init_params(key, input_channels, base_channels, latent_channels, attribute_dim):
    C = base_channels
    A = attribute_dim
    shapes = {
        # Encoder Conv2d: (C_out, C_in, 4, 4)
        "enc_w1": (C, input_channels, 4, 4),
        "enc_b1": (C,),
        "enc_w2": (2 * C, C, 4, 4),
        "enc_b2": (2 * C,),
        "enc_w3": (latent_channels, 2 * C, 4, 4),
        "enc_b3": (latent_channels,),
        # Decoder ConvTranspose2d: (C_in, C_out, 4, 4)
        "dec_w1": (latent_channels + A, 2 * C, 4, 4),
        "dec_b1": (2 * C,),
        "dec_w2": (2 * C + A, C, 4, 4),
        "dec_b2": (C,),
        "dec_w3": (C + A, input_channels, 4, 4),
        "dec_b3": (input_channels,),
    }
    params = {}
    keys = jax.random.split(key, len(shapes))
    for k_, (name, shape) in zip(keys, sorted(shapes.items())):
        params[name] = 0.05 * jax.random.normal(k_, shape, dtype=jnp.float32)
    return params


# ----------------------------------------------------------------------------
# Main
# ----------------------------------------------------------------------------
if __name__ == "__main__":
    B = 2
    input_channels = 3
    base_channels = 8
    latent_channels = 32
    attribute_dim = 8
    H = W = 16

    root = jax.random.PRNGKey(0)
    k_params, k_x, k_attr = jax.random.split(root, 3)

    params = init_params(k_params, input_channels, base_channels,
                         latent_channels, attribute_dim)
    x = jax.random.normal(k_x, (B, input_channels, H, W), dtype=jnp.float32)
    attributes = jax.random.bernoulli(
        k_attr, 0.5, (B, attribute_dim)).astype(jnp.float32)

    # Weights packed/padded/cast once, outside the per-forward critical path.
    packed, meta = prepare_params(params)
    fwd = jax.jit(partial(fader_network_forward, meta=meta))

    latent, reconstructed = fwd(packed, x, attributes)
    jax.block_until_ready((latent, reconstructed))

    assert latent.shape == (B, latent_channels, H // 8, W // 8), latent.shape
    assert reconstructed.shape == (B, input_channels, H, W), reconstructed.shape
    assert bool(jnp.all(jnp.isfinite(latent)))
    assert bool(jnp.all(jnp.isfinite(reconstructed)))

    # Sanity check against the full-f32 XLA reference (bf16 MXU operands +
    # bf16 inter-layer activations give small rounding differences).
    lat_ref, rec_ref = jax.jit(_ref_forward)(params, x, attributes)
    jax.block_until_ready((lat_ref, rec_ref))
    err = max(float(jnp.max(jnp.abs(latent - lat_ref))),
              float(jnp.max(jnp.abs(reconstructed - rec_ref))))
    assert err < 0.05, f"max abs diff vs reference too large: {err}"

    print("KERNEL_OK")
</pallas_src>

<mosaic_0001>
module attributes {stable_mosaic.version = 11 : i64} {
  func.func @_matmul_kernel_single_k(%arg0: i32, %arg1: i32, %arg2: memref<64x128xbf16, #tpu.memory_space<vmem>>, %arg3: memref<128x128xbf16, #tpu.memory_space<vmem>>, %arg4: memref<1x128xf32, #tpu.memory_space<vmem>>, %arg5: memref<64x128xbf16, #tpu.memory_space<vmem>>) attributes {dimension_semantics = [#tpu.dimension_semantics<parallel>, #tpu.dimension_semantics<parallel>], iteration_bounds = array<i64: 2, 1>, scalar_prefetch = 0 : i64, scratch_operands = 0 : i64, tpu.core_type = #tpu.core_type<tc>, window_params = [{transform_indices = @transform_0, window_bounds = array<i64: 64, 128>}, {transform_indices = @transform_1, window_bounds = array<i64: 128, 128>}, {transform_indices = @transform_2, window_bounds = array<i64: 1, 128>}, {transform_indices = @transform_3, window_bounds = array<i64: 64, 128>}]} {
    %c0 = arith.constant 0 : index
    %c0_0 = arith.constant 0 : index
    %0 = vector.load %arg2[%c0, %c0_0] : memref<64x128xbf16, #tpu.memory_space<vmem>>, vector<64x128xbf16>
    %c0_1 = arith.constant 0 : index
    %c0_2 = arith.constant 0 : index
    %1 = vector.load %arg3[%c0_1, %c0_2] : memref<128x128xbf16, #tpu.memory_space<vmem>>, vector<128x128xbf16>
    %cst = arith.constant dense<0.000000e+00> : vector<64x128xf32>
    %2 = tpu.matmul %0, %1, %cst {dimension_numbers = #tpu.dot_dimension_numbers<[1], [0], [0], [1], [0, 0, 1, 1], [], []>} : vector<64x128xbf16>, vector<128x128xbf16>, vector<64x128xf32> -> vector<64x128xf32>
    %c0_3 = arith.constant 0 : index
    %c0_4 = arith.constant 0 : index
    %3 = vector.load %arg4[%c0_3, %c0_4] : memref<1x128xf32, #tpu.memory_space<vmem>>, vector<1x128xf32>
    %4 = vector.broadcast %3 : vector<1x128xf32> to vector<64x128xf32>
    %5 = arith.addf %2, %4 : vector<64x128xf32>
    %cst_5 = arith.constant 0.000000e+00 : f32
    %6 = vector.broadcast %cst_5 : f32 to vector<64x128xf32>
    %7 = arith.cmpf oge, %5, %6 : vector<64x128xf32>
    %cst_6 = arith.constant 2.000000e-01 : f32
    %8 = vector.broadcast %cst_6 : f32 to vector<64x128xf32>
    %9 = arith.mulf %8, %5 : vector<64x128xf32>
    %10 = arith.select %7, %5, %9 : vector<64x128xi1>, vector<64x128xf32>
    %11 = arith.truncf %10 : vector<64x128xf32> to vector<64x128xbf16>
    %c0_7 = arith.constant 0 : index
    %c0_8 = arith.constant 0 : index
    %12 = vector.load %arg5[%c0_7, %c0_8] : memref<64x128xbf16, #tpu.memory_space<vmem>>, vector<64x128xbf16>
    tpu.vector_store %arg5[%c0_7, %c0_8], %11 {strides = array<i32>} : memref<64x128xbf16, #tpu.memory_space<vmem>>, vector<64x128xbf16>,
    return
  }
  func.func @transform_0(%arg0: i32, %arg1: i32) -> (i32, i32) {
    %c0_i32 = arith.constant 0 : i32
    %c0_i32_0 = arith.constant 0 : i32
    return %arg0, %c0_i32 : i32, i32
  }
  func.func @transform_1(%arg0: i32, %arg1: i32) -> (i32, i32) {
    %c0_i32 = arith.constant 0 : i32
    %c0_i32_0 = arith.constant 0 : i32
    return %c0_i32, %arg1 : i32, i32
  }
  func.func @transform_2(%arg0: i32, %arg1: i32) -> (i32, i32) {
    %c0_i32 = arith.constant 0 : i32
    %c0_i32_0 = arith.constant 0 : i32
    return %c0_i32, %arg1 : i32, i32
  }
  func.func @transform_3(%arg0: i32, %arg1: i32) -> (i32, i32) {
    %c0_i32 = arith.constant 0 : i32
    return %arg0, %arg1 : i32, i32
  }
}

module attributes {stable_mosaic.version = 11 : i64} {
  func.func @_matmul_kernel_single_k(%arg0: i32, %arg1: i32, %arg2: memref<16x128xbf16, #tpu.memory_space<vmem>>, %arg3: memref<128x128xbf16, #tpu.memory_space<vmem>>, %arg4: memref<1x128xf32, #tpu.memory_space<vmem>>, %arg5: memref<16x128xbf16, #tpu.memory_space<vmem>>) attributes {dimension_semantics = [#tpu.dimension_semantics<parallel>, #tpu.dimension_semantics<parallel>], iteration_bounds = array<i64: 2, 1>, scalar_prefetch = 0 : i64, scratch_operands = 0 : i64, tpu.core_type = #tpu.core_type<tc>, window_params = [{transform_indices = @transform_0, window_bounds = array<i64: 16, 128>}, {transform_indices = @transform_1, window_bounds = array<i64: 128, 128>}, {transform_indices = @transform_2, window_bounds = array<i64: 1, 128>}, {transform_indices = @transform_3, window_bounds = array<i64: 16, 128>}]} {
    %c0 = arith.constant 0 : index
    %c0_0 = arith.constant 0 : index
    %0 = vector.load %arg2[%c0, %c0_0] : memref<16x128xbf16, #tpu.memory_space<vmem>>, vector<16x128xbf16>
    %c0_1 = arith.constant 0 : index
    %c0_2 = arith.constant 0 : index
    %1 = vector.load %arg3[%c0_1, %c0_2] : memref<128x128xbf16, #tpu.memory_space<vmem>>, vector<128x128xbf16>
    %cst = arith.constant dense<0.000000e+00> : vector<16x128xf32>
    %2 = tpu.matmul %0, %1, %cst {dimension_numbers = #tpu.dot_dimension_numbers<[1], [0], [0], [1], [0, 0, 1, 1], [], []>} : vector<16x128xbf16>, vector<128x128xbf16>, vector<16x128xf32> -> vector<16x128xf32>
    %c0_3 = arith.constant 0 : index
    %c0_4 = arith.constant 0 : index
    %3 = vector.load %arg4[%c0_3, %c0_4] : memref<1x128xf32, #tpu.memory_space<vmem>>, vector<1x128xf32>
    %4 = vector.broadcast %3 : vector<1x128xf32> to vector<16x128xf32>
    %5 = arith.addf %2, %4 : vector<16x128xf32>
    %cst_5 = arith.constant 0.000000e+00 : f32
    %6 = vector.broadcast %cst_5 : f32 to vector<16x128xf32>
    %7 = arith.cmpf oge, %5, %6 : vector<16x128xf32>
    %cst_6 = arith.constant 2.000000e-01 : f32
    %8 = vector.broadcast %cst_6 : f32 to vector<16x128xf32>
    %9 = arith.mulf %8, %5 : vector<16x128xf32>
    %10 = arith.select %7, %5, %9 : vector<16x128xi1>, vector<16x128xf32>
    %11 = arith.truncf %10 : vector<16x128xf32> to vector<16x128xbf16>
    %c0_7 = arith.constant 0 : index
    %c0_8 = arith.constant 0 : index
    %12 = vector.load %arg5[%c0_7, %c0_8] : memref<16x128xbf16, #tpu.memory_space<vmem>>, vector<16x128xbf16>
    tpu.vector_store %arg5[%c0_7, %c0_8], %11 {strides = array<i32>} : memref<16x128xbf16, #tpu.memory_space<vmem>>, vector<16x128xbf16>,
    return
  }
  func.func @transform_0(%arg0: i32, %arg1: i32) -> (i32, i32) {
    %c0_i32 = arith.constant 0 : i32
    %c0_i32_0 = arith.constant 0 : i32
    return %arg0, %c0_i32 : i32, i32
  }
  func.func @transform_1(%arg0: i32, %arg1: i32) -> (i32, i32) {
    %c0_i32 = arith.constant 0 : i32
    %c0_i32_0 = arith.constant 0 : i32
    return %c0_i32, %arg1 : i32, i32
  }
  func.func @transform_2(%arg0: i32, %arg1: i32) -> (i32, i32) {
    %c0_i32 = arith.constant 0 : i32
    %c0_i32_0 = arith.constant 0 : i32
    return %c0_i32, %arg1 : i32, i32
  }
  func.func @transform_3(%arg0: i32, %arg1: i32) -> (i32, i32) {
    %c0_i32 = arith.constant 0 : i32
    return %arg0, %arg1 : i32, i32
  }
}

module attributes {stable_mosaic.version = 11 : i64} {
  func.func @_matmul_kernel_single_k(%arg0: i32, %arg1: i32, %arg2: memref<16x256xbf16, #tpu.memory_space<vmem>>, %arg3: memref<256x128xbf16, #tpu.memory_space<vmem>>, %arg4: memref<1x128xf32, #tpu.memory_space<vmem>>, %arg5: memref<16x128xf32, #tpu.memory_space<vmem>>) attributes {dimension_semantics = [#tpu.dimension_semantics<parallel>, #tpu.dimension_semantics<parallel>], iteration_bounds = array<i64: 1, 1>, scalar_prefetch = 0 : i64, scratch_operands = 0 : i64, tpu.core_type = #tpu.core_type<tc>, window_params = [{transform_indices = @transform_0, window_bounds = array<i64: 16, 256>}, {transform_indices = @transform_1, window_bounds = array<i64: 256, 128>}, {transform_indices = @transform_2, window_bounds = array<i64: 1, 128>}, {transform_indices = @transform_3, window_bounds = array<i64: 16, 128>}]} {
    %c0 = arith.constant 0 : index
    %c0_0 = arith.constant 0 : index
    %0 = vector.load %arg2[%c0, %c0_0] : memref<16x256xbf16, #tpu.memory_space<vmem>>, vector<16x256xbf16>
    %c0_1 = arith.constant 0 : index
    %c0_2 = arith.constant 0 : index
    %1 = vector.load %arg3[%c0_1, %c0_2] : memref<256x128xbf16, #tpu.memory_space<vmem>>, vector<256x128xbf16>
    %cst = arith.constant dense<0.000000e+00> : vector<16x128xf32>
    %2 = tpu.matmul %0, %1, %cst {dimension_numbers = #tpu.dot_dimension_numbers<[1], [0], [0], [1], [0, 0, 1, 1], [], []>} : vector<16x256xbf16>, vector<256x128xbf16>, vector<16x128xf32> -> vector<16x128xf32>
    %c0_3 = arith.constant 0 : index
    %c0_4 = arith.constant 0 : index
    %3 = vector.load %arg4[%c0_3, %c0_4] : memref<1x128xf32, #tpu.memory_space<vmem>>, vector<1x128xf32>
    %4 = vector.broadcast %3 : vector<1x128xf32> to vector<16x128xf32>
    %5 = arith.addf %2, %4 : vector<16x128xf32>
    %cst_5 = arith.constant 0.000000e+00 : f32
    %6 = vector.broadcast %cst_5 : f32 to vector<16x128xf32>
    %7 = arith.cmpf oge, %5, %6 : vector<16x128xf32>
    %cst_6 = arith.constant 2.000000e-01 : f32
    %8 = vector.broadcast %cst_6 : f32 to vector<16x128xf32>
    %9 = arith.mulf %8, %5 : vector<16x128xf32>
    %10 = arith.select %7, %5, %9 : vector<16x128xi1>, vector<16x128xf32>
    %c0_7 = arith.constant 0 : index
    %c0_8 = arith.constant 0 : index
    %11 = vector.load %arg5[%c0_7, %c0_8] : memref<16x128xf32, #tpu.memory_space<vmem>>, vector<16x128xf32>
    tpu.vector_store %arg5[%c0_7, %c0_8], %10 {strides = array<i32>} : memref<16x128xf32, #tpu.memory_space<vmem>>, vector<16x128xf32>,
    return
  }
  func.func @transform_0(%arg0: i32, %arg1: i32) -> (i32, i32) {
    %c0_i32 = arith.constant 0 : i32
    %c0_i32_0 = arith.constant 0 : i32
    return %arg0, %c0_i32 : i32, i32
  }
  func.func @transform_1(%arg0: i32, %arg1: i32) -> (i32, i32) {
    %c0_i32 = arith.constant 0 : i32
    %c0_i32_0 = arith.constant 0 : i32
    return %c0_i32, %arg1 : i32, i32
  }
  func.func @transform_2(%arg0: i32, %arg1: i32) -> (i32, i32) {
    %c0_i32 = arith.constant 0 : i32
    %c0_i32_0 = arith.constant 0 : i32
    return %c0_i32, %arg1 : i32, i32
  }
  func.func @transform_3(%arg0: i32, %arg1: i32) -> (i32, i32) {
    %c0_i32 = arith.constant 0 : i32
    return %arg0, %arg1 : i32, i32
  }
}

module attributes {stable_mosaic.version = 11 : i64} {
  func.func @_matmul_kernel_single_k(%arg0: i32, %arg1: i32, %arg2: memref<16x384xbf16, #tpu.memory_space<vmem>>, %arg3: memref<384x128xbf16, #tpu.memory_space<vmem>>, %arg4: memref<1x128xf32, #tpu.memory_space<vmem>>, %arg5: memref<16x128xbf16, #tpu.memory_space<vmem>>) attributes {dimension_semantics = [#tpu.dimension_semantics<parallel>, #tpu.dimension_semantics<parallel>], iteration_bounds = array<i64: 1, 1>, scalar_prefetch = 0 : i64, scratch_operands = 0 : i64, tpu.core_type = #tpu.core_type<tc>, window_params = [{transform_indices = @transform_0, window_bounds = array<i64: 16, 384>}, {transform_indices = @transform_1, window_bounds = array<i64: 384, 128>}, {transform_indices = @transform_2, window_bounds = array<i64: 1, 128>}, {transform_indices = @transform_3, window_bounds = array<i64: 16, 128>}]} {
    %c0 = arith.constant 0 : index
    %c0_0 = arith.constant 0 : index
    %0 = vector.load %arg2[%c0, %c0_0] : memref<16x384xbf16, #tpu.memory_space<vmem>>, vector<16x384xbf16>
    %c0_1 = arith.constant 0 : index
    %c0_2 = arith.constant 0 : index
    %1 = vector.load %arg3[%c0_1, %c0_2] : memref<384x128xbf16, #tpu.memory_space<vmem>>, vector<384x128xbf16>
    %cst = arith.constant dense<0.000000e+00> : vector<16x128xf32>
    %2 = tpu.matmul %0, %1, %cst {dimension_numbers = #tpu.dot_dimension_numbers<[1], [0], [0], [1], [0, 0, 1, 1], [], []>} : vector<16x384xbf16>, vector<384x128xbf16>, vector<16x128xf32> -> vector<16x128xf32>
    %c0_3 = arith.constant 0 : index
    %c0_4 = arith.constant 0 : index
    %3 = vector.load %arg4[%c0_3, %c0_4] : memref<1x128xf32, #tpu.memory_space<vmem>>, vector<1x128xf32>
    %4 = vector.broadcast %3 : vector<1x128xf32> to vector<16x128xf32>
    %5 = arith.addf %2, %4 : vector<16x128xf32>
    %cst_5 = arith.constant 0.000000e+00 : f32
    %6 = vector.broadcast %cst_5 : f32 to vector<16x128xf32>
    %7 = arith.maximumf %5, %6 : vector<16x128xf32>
    %8 = arith.truncf %7 : vector<16x128xf32> to vector<16x128xbf16>
    %c0_6 = arith.constant 0 : index
    %c0_7 = arith.constant 0 : index
    %9 = vector.load %arg5[%c0_6, %c0_7] : memref<16x128xbf16, #tpu.memory_space<vmem>>, vector<16x128xbf16>
    tpu.vector_store %arg5[%c0_6, %c0_7], %8 {strides = array<i32>} : memref<16x128xbf16, #tpu.memory_space<vmem>>, vector<16x128xbf16>,
    return
  }
  func.func @transform_0(%arg0: i32, %arg1: i32) -> (i32, i32) {
    %c0_i32 = arith.constant 0 : i32
    %c0_i32_0 = arith.constant 0 : i32
    return %arg0, %c0_i32 : i32, i32
  }
  func.func @transform_1(%arg0: i32, %arg1: i32) -> (i32, i32) {
    %c0_i32 = arith.constant 0 : i32
    %c0_i32_0 = arith.constant 0 : i32
    return %c0_i32, %arg1 : i32, i32
  }
  func.func @transform_2(%arg0: i32, %arg1: i32) -> (i32, i32) {
    %c0_i32 = arith.constant 0 : i32
    %c0_i32_0 = arith.constant 0 : i32
    return %c0_i32, %arg1 : i32, i32
  }
  func.func @transform_3(%arg0: i32, %arg1: i32) -> (i32, i32) {
    %c0_i32 = arith.constant 0 : i32
    return %arg0, %arg1 : i32, i32
  }
}

module attributes {stable_mosaic.version = 11 : i64} {
  func.func @_matmul_kernel_single_k(%arg0: i32, %arg1: i32, %arg2: memref<16x256xbf16, #tpu.memory_space<vmem>>, %arg3: memref<256x128xbf16, #tpu.memory_space<vmem>>, %arg4: memref<1x128xf32, #tpu.memory_space<vmem>>, %arg5: memref<16x128xbf16, #tpu.memory_space<vmem>>) attributes {dimension_semantics = [#tpu.dimension_semantics<parallel>, #tpu.dimension_semantics<parallel>], iteration_bounds = array<i64: 2, 1>, scalar_prefetch = 0 : i64, scratch_operands = 0 : i64, tpu.core_type = #tpu.core_type<tc>, window_params = [{transform_indices = @transform_0, window_bounds = array<i64: 16, 256>}, {transform_indices = @transform_1, window_bounds = array<i64: 256, 128>}, {transform_indices = @transform_2, window_bounds = array<i64: 1, 128>}, {transform_indices = @transform_3, window_bounds = array<i64: 16, 128>}]} {
    %c0 = arith.constant 0 : index
    %c0_0 = arith.constant 0 : index
    %0 = vector.load %arg2[%c0, %c0_0] : memref<16x256xbf16, #tpu.memory_space<vmem>>, vector<16x256xbf16>
    %c0_1 = arith.constant 0 : index
    %c0_2 = arith.constant 0 : index
    %1 = vector.load %arg3[%c0_1, %c0_2] : memref<256x128xbf16, #tpu.memory_space<vmem>>, vector<256x128xbf16>
    %cst = arith.constant dense<0.000000e+00> : vector<16x128xf32>
    %2 = tpu.matmul %0, %1, %cst {dimension_numbers = #tpu.dot_dimension_numbers<[1], [0], [0], [1], [0, 0, 1, 1], [], []>} : vector<16x256xbf16>, vector<256x128xbf16>, vector<16x128xf32> -> vector<16x128xf32>
    %c0_3 = arith.constant 0 : index
    %c0_4 = arith.constant 0 : index
    %3 = vector.load %arg4[%c0_3, %c0_4] : memref<1x128xf32, #tpu.memory_space<vmem>>, vector<1x128xf32>
    %4 = vector.broadcast %3 : vector<1x128xf32> to vector<16x128xf32>
    %5 = arith.addf %2, %4 : vector<16x128xf32>
    %cst_5 = arith.constant 0.000000e+00 : f32
    %6 = vector.broadcast %cst_5 : f32 to vector<16x128xf32>
    %7 = arith.maximumf %5, %6 : vector<16x128xf32>
    %8 = arith.truncf %7 : vector<16x128xf32> to vector<16x128xbf16>
    %c0_6 = arith.constant 0 : index
    %c0_7 = arith.constant 0 : index
    %9 = vector.load %arg5[%c0_6, %c0_7] : memref<16x128xbf16, #tpu.memory_space<vmem>>, vector<16x128xbf16>
    tpu.vector_store %arg5[%c0_6, %c0_7], %8 {strides = array<i32>} : memref<16x128xbf16, #tpu.memory_space<vmem>>, vector<16x128xbf16>,
    return
  }
  func.func @transform_0(%arg0: i32, %arg1: i32) -> (i32, i32) {
    %c0_i32 = arith.constant 0 : i32
    %c0_i32_0 = arith.constant 0 : i32
    return %arg0, %c0_i32 : i32, i32
  }
  func.func @transform_1(%arg0: i32, %arg1: i32) -> (i32, i32) {
    %c0_i32 = arith.constant 0 : i32
    %c0_i32_0 = arith.constant 0 : i32
    return %c0_i32, %arg1 : i32, i32
  }
  func.func @transform_2(%arg0: i32, %arg1: i32) -> (i32, i32) {
    %c0_i32 = arith.constant 0 : i32
    %c0_i32_0 = arith.constant 0 : i32
    return %c0_i32, %arg1 : i32, i32
  }
  func.func @transform_3(%arg0: i32, %arg1: i32) -> (i32, i32) {
    %c0_i32 = arith.constant 0 : i32
    return %arg0, %arg1 : i32, i32
  }
}

module attributes {stable_mosaic.version = 11 : i64} {
  func.func @_matmul_kernel_single_k(%arg0: i32, %arg1: i32, %arg2: memref<64x256xbf16, #tpu.memory_space<vmem>>, %arg3: memref<256x128xbf16, #tpu.memory_space<vmem>>, %arg4: memref<1x128xf32, #tpu.memory_space<vmem>>, %arg5: memref<64x128xf32, #tpu.memory_space<vmem>>) attributes {dimension_semantics = [#tpu.dimension_semantics<parallel>, #tpu.dimension_semantics<parallel>], iteration_bounds = array<i64: 2, 1>, scalar_prefetch = 0 : i64, scratch_operands = 0 : i64, tpu.core_type = #tpu.core_type<tc>, window_params = [{transform_indices = @transform_0, window_bounds = array<i64: 64, 256>}, {transform_indices = @transform_1, window_bounds = array<i64: 256, 128>}, {transform_indices = @transform_2, window_bounds = array<i64: 1, 128>}, {transform_indices = @transform_3, window_bounds = array<i64: 64, 128>}]} {
    %c0 = arith.constant 0 : index
    %c0_0 = arith.constant 0 : index
    %0 = vector.load %arg2[%c0, %c0_0] : memref<64x256xbf16, #tpu.memory_space<vmem>>, vector<64x256xbf16>
    %c0_1 = arith.constant 0 : index
    %c0_2 = arith.constant 0 : index
    %1 = vector.load %arg3[%c0_1, %c0_2] : memref<256x128xbf16, #tpu.memory_space<vmem>>, vector<256x128xbf16>
    %cst = arith.constant dense<0.000000e+00> : vector<64x128xf32>
    %2 = tpu.matmul %0, %1, %cst {dimension_numbers = #tpu.dot_dimension_numbers<[1], [0], [0], [1], [0, 0, 1, 1], [], []>} : vector<64x256xbf16>, vector<256x128xbf16>, vector<64x128xf32> -> vector<64x128xf32>
    %c0_3 = arith.constant 0 : index
    %c0_4 = arith.constant 0 : index
    %3 = vector.load %arg4[%c0_3, %c0_4] : memref<1x128xf32, #tpu.memory_space<vmem>>, vector<1x128xf32>
    %4 = vector.broadcast %3 : vector<1x128xf32> to vector<64x128xf32>
    %5 = arith.addf %2, %4 : vector<64x128xf32>
    %6 = math.tanh %5 : vector<64x128xf32>
    %c0_5 = arith.constant 0 : index
    %c0_6 = arith.constant 0 : index
    %7 = vector.load %arg5[%c0_5, %c0_6] : memref<64x128xf32, #tpu.memory_space<vmem>>, vector<64x128xf32>
    tpu.vector_store %arg5[%c0_5, %c0_6], %6 {strides = array<i32>} : memref<64x128xf32, #tpu.memory_space<vmem>>, vector<64x128xf32>,
    return
  }
  func.func @transform_0(%arg0: i32, %arg1: i32) -> (i32, i32) {
    %c0_i32 = arith.constant 0 : i32
    %c0_i32_0 = arith.constant 0 : i32
    return %arg0, %c0_i32 : i32, i32
  }
  func.func @transform_1(%arg0: i32, %arg1: i32) -> (i32, i32) {
    %c0_i32 = arith.constant 0 : i32
    %c0_i32_0 = arith.constant 0 : i32
    return %c0_i32, %arg1 : i32, i32
  }
  func.func @transform_2(%arg0: i32, %arg1: i32) -> (i32, i32) {
    %c0_i32 = arith.constant 0 : i32
    %c0_i32_0 = arith.constant 0 : i32
    return %c0_i32, %arg1 : i32, i32
  }
  func.func @transform_3(%arg0: i32, %arg1: i32) -> (i32, i32) {
    %c0_i32 = arith.constant 0 : i32
    return %arg0, %arg1 : i32, i32
  }
}

</mosaic_0001>

<bundles_post_ra>
// kernel: fader_network_forward.6
= control target key start
LH: loop header
LB: loop body
LE: loop exit
PB: predicated region body
PF: predicated region fallthrough
CT: control target
= control target key end

     0   :  { %s757_s12 = smov 0   ;;  %s759_s13 = smov 0   ;;  %s830_s0 = inlined_call_operand.vmem [shape: bf16[128,128], index: 0, kind: input, shape index: {}]   ;;  %s831_s1 = inlined_call_operand.vmem [shape: bf16[128,128], index: 1, kind: input, shape index: {}]   ;;  %s832_s2 = inlined_call_operand.vmem [shape: f32[1,128], index: 2, kind: input, shape index: {}]   ;;  %s833_s3 = inlined_call_operand.vmem [shape: bf16[128,128], index: 3, kind: output, shape index: {}]  }
   0x1   :  { %s761_s14 = smov 0  }
   0x2 LB: > { %s25_s15 = sadd.s32 1, %s731_s13  ;;  %p566_p0 = scmp.ge.s32.totalorder %s735_s14, 1  ;;  %s735_s14 = sphi %s761_s14, %s13_s14   ;;  %s731_s13 = sphi %s759_s13, %s835_s13   ;;  %s727_s12 = sphi %s757_s12, %s834_s12  }
   0x3   : > { %p27_p1 = scmp.ge.s32.totalorder %s25_s15, 2  ;;  %p169_p2 = scmp.lt.s32.totalorder %s735_s14, 3 }
   0x5   : > { %s837_s15 = smov (%p27_p1, %s25_s15), 0  ;;  %p170_p3 = pnand %p566_p0, %p169_p2 }
   0x6   : > { %s567_s18 = sshll.u32 (!%p170_p3), %s727_s12, 3 }
   0x7   : > { %173 = sbr.rel (%p170_p3) target bundleno = 254 (0xfe), region = 32  ;;  %p204_p4 = scmp.lt.s32.totalorder (!%p170_p3), %s567_s18, 15 }
   0xc   : > { %v701_v0 = vld [vmem:[%s831_s1 + $0x38] sm:$0xff]   ;;  %v702_v1 = vld [vmem:[%s831_s1 + $0x30] sm:$0xff]   ;;  %s839_s18 = smov (!%p204_p4, %s567_s18), 15  ;;  %v703_v2 = vld [vmem:[%s831_s1 + $0x28] sm:$0xff]  }
   0xd   : > { %637 = vmatprep.subr.bf16.mxu0 %v701_v0  ;;  %661 = vmatprep.subr.bf16.mxu1 %v701_v0  ;;  %s568_s23 = sshll.u32 %s839_s18, 2  ;;  %v704_v3 = vld [vmem:[%s831_s1 + $0x20] sm:$0xff]   ;;  %v705_v6 = vld [vmem:[%s831_s1 + $0x18] sm:$0xff]   ;;  %v706_v7 = vld [vmem:[%s831_s1 + $0x10] sm:$0xff]  }
   0xe   : > { %638 = vmatpush3.bf16.msra.mxu0 %v701_v0  ;;  %669 = vmatpush3.bf16.msra.mxu1 %v701_v0  ;;  %s792_s26 = scalar_lea.vmem %s830_s0, %s568_s23  ;;  %v707_v8 = vld [vmem:[%s831_s1 + $0x8] sm:$0xff]   ;;  %v708_v9 = vld [vmem:[%s831_s1] sm:$0xff]   ;;  %s223_s17 = scalar_lea.vmem %s833_s3, %s568_s23 }
   0xf   : > { %639 = vmatprep.subr.bf16.mxu0 %v702_v1  ;;  %662 = vmatprep.subr.bf16.mxu1 %v702_v1  ;;  %v709_v4 = vld [vmem:[%s792_s26] sm:$0xff]   ;;  %v710_v5 = vld [vmem:[%s792_s26 + $0x10] sm:$0xff]   ;;  %v711_v10 = vld [vmem:[%s792_s26 + $0x8] sm:$0xff]  }
  0x10   : > { %653 = vmatprep.mubr.bf16.mxu0 %v709_v4  ;;  %657 = vmatprep.mubr.bf16.mxu1 %v710_v5  ;;  %v712_v11 = vld [vmem:[%s792_s26 + $0x18] sm:$0xff]   ;;  %v571_v12 = vld [vmem:[%s832_s2] ss:$0 sm:$0xff] }
  0x12   : > { %640 = vmatpush3.bf16.msra.mxu0 %v702_v1  ;;  %670 = vmatpush3.bf16.msra.mxu1 %v702_v1 }
  0x13   : > { %641 = vmatprep.subr.bf16.mxu0 %v703_v2  ;;  %663 = vmatprep.subr.bf16.mxu1 %v703_v2 }
  0x16   : > { %642 = vmatpush3.bf16.msra.mxu0 %v703_v2  ;;  %671 = vmatpush3.bf16.msra.mxu1 %v703_v2 }
  0x17   : > { %643 = vmatprep.subr.bf16.mxu0 %v704_v3  ;;  %664 = vmatprep.subr.bf16.mxu1 %v704_v3 }
  0x1a   : > { %644 = vmatpush3.bf16.msra.mxu0 %v704_v3  ;;  %672 = vmatpush3.bf16.msra.mxu1 %v704_v3 }
  0x1b   : > { %645 = vmatprep.subr.bf16.mxu0 %v705_v6  ;;  %665 = vmatprep.subr.bf16.mxu1 %v705_v6 }
  0x1e   : > { %646 = vmatpush3.bf16.msra.mxu0 %v705_v6  ;;  %673 = vmatpush3.bf16.msra.mxu1 %v705_v6 }
  0x1f   : > { %647 = vmatprep.subr.bf16.mxu0 %v706_v7  ;;  %666 = vmatprep.subr.bf16.mxu1 %v706_v7 }
  0x22   : > { %648 = vmatpush3.bf16.msra.mxu0 %v706_v7  ;;  %674 = vmatpush3.bf16.msra.mxu1 %v706_v7 }
  0x23   : > { %649 = vmatprep.subr.bf16.mxu0 %v707_v8  ;;  %667 = vmatprep.subr.bf16.mxu1 %v707_v8 }
  0x26   : > { %650 = vmatpush3.bf16.msra.mxu0 %v707_v8  ;;  %675 = vmatpush3.bf16.msra.mxu1 %v707_v8 }
  0x27   : > { %651 = vmatprep.subr.bf16.mxu0 %v708_v9  ;;  %668 = vmatprep.subr.bf16.mxu1 %v708_v9 }
  0x2a   : > { %652 = vmatpush3.bf16.msra.mxu0 %v708_v9  ;;  %676 = vmatpush3.bf16.msra.mxu1 %v708_v9 }
  0x2d   : > { %654 = vmatmul.mubr.bf16.vlgmr.msra.gmra.mxu0 %v711_v10  ;;  %658 = vmatmul.mubr.bf16.vlgmr.msra.gmra.mxu1 %v712_v11 }
  0xed   : > { %v655_v13 = vpop.f32.mrf.mxu0  ;;  %v659_v14 = vpop.f32.mrf.mxu1 }
  0xee   : > { %v372_v15 = vadd.f32 %v655_v13, %v571_v12  ;;  %v388_v16 = vadd.f32 %v659_v14, %v571_v12 }
  0xef   : > { %v363_v17 = vpop.f32.mrf.mxu0  ;;  %v379_v18 = vpop.f32.mrf.mxu1 }
  0xf0   : > { %vm396_vm0 = vcmp.ge.f32.partialorder %v372_v15, 0.0  ;;  %v404_v19 = vmul.f32 0.2, %v372_v15  ;;  %vm400_vm1 = vcmp.ge.f32.partialorder %v388_v16, 0.0  ;;  %v408_v20 = vmul.f32 0.2, %v388_v16 }
  0xf1   : > { %v364_v21 = vadd.f32 %v571_v12, %v363_v17  ;;  %v656_v22 = vpop.f32.mrf.mxu0  ;;  %v660_v23 = vpop.f32.mrf.mxu1  ;;  %v380_v24 = vadd.f32 %v571_v12, %v379_v18 }
  0xf2   : > { %v375_v25 = vadd.f32 %v656_v22, %v571_v12  ;;  %v391_v26 = vadd.f32 %v660_v23, %v571_v12  ;;  %v412_v27 = vsel %vm396_vm0, %v372_v15, %v404_v19  ;;  %v416_v28 = vsel %vm400_vm1, %v388_v16, %v408_v20 }
  0xf3   : > { %v366_v29 = vpop.f32.mrf.mxu0  ;;  %v382_v30 = vpop.f32.mrf.mxu1  ;;  %vm394_vm4 = vcmp.ge.f32.partialorder %v364_v21, 0.0  ;;  %v402_v33 = vmul.f32 0.2, %v364_v21  ;;  %vm398_vm5 = vcmp.ge.f32.partialorder %v380_v24, 0.0  ;;  %v406_v36 = vmul.f32 0.2, %v380_v24 }
  0xf4   : > { %vm397_vm2 = vcmp.ge.f32.partialorder %v375_v25, 0.0  ;;  %v405_v31 = vmul.f32 0.2, %v375_v25  ;;  %vm401_vm3 = vcmp.ge.f32.partialorder %v391_v26, 0.0  ;;  %v409_v32 = vmul.f32 0.2, %v391_v26 }
  0xf5   : > { %v367_v34 = vadd.f32 %v571_v12, %v366_v29  ;;  %v383_v35 = vadd.f32 %v571_v12, %v382_v30  ;;  %v410_v43 = vsel %vm394_vm4, %v364_v21, %v402_v33  ;;  %v414_v45 = vsel %vm398_vm5, %v380_v24, %v406_v36 }
  0xf6   : > { %v413_v37 = vsel %vm397_vm2, %v375_v25, %v405_v31  ;;  %v417_v38 = vsel %vm401_vm3, %v391_v26, %v409_v32 }
  0xf7   : > { %v610_v39 = vpack.c.bf16 %v413_v37, %v412_v27  ;;  %v620_v40 = vpack.c.bf16 %v417_v38, %v416_v28  ;;  %vm395_vm6 = vcmp.ge.f32.partialorder %v367_v34, 0.0  ;;  %v403_v41 = vmul.f32 0.2, %v367_v34 }
  0xf8   : > { %vm399_vm7 = vcmp.ge.f32.partialorder %v383_v35, 0.0  ;;  %v407_v42 = vmul.f32 0.2, %v383_v35 }
  0xf9   : > { %622 = vst [vmem:[%s223_s17 + $0x8] sm:$0xff] %v610_v39   ;;  %624 = vst [vmem:[%s223_s17 + $0x18] sm:$0xff] %v620_v40   ;;  %v411_v44 = vsel %vm395_vm6, %v367_v34, %v403_v41 }
  0xfa   : > { %v605_v46 = vpack.c.bf16 %v411_v44, %v410_v43  ;;  %v415_v47 = vsel %vm399_vm7, %v383_v35, %v407_v42 }
  0xfb   : > { %v615_v48 = vpack.c.bf16 %v415_v47, %v414_v45 }
  0xfc   : > { %606 = vst [vmem:[%s223_s17] sm:$0xff] %v605_v46  }
  0xfd   : > { %623 = vst [vmem:[%s223_s17 + $0x10] sm:$0xff] %v615_v48  }
  0xfe PF: > { %s13_s14 = sadd.s32 1, %s735_s14   ;;  %s834_s12 = smov %s731_s13 }
  0xff   : > { %p10_p5 = scmp.ge.s32.totalorder %s13_s14, 4   ;;  %s835_s13 = smov %s837_s15 }
 0x101   :  { %12 = sbr.rel (!%p10_p5) target bundleno = 2 (0x2), region = 68 }

// kernel: fader_network_forward.7
= control target key start
LH: loop header
LB: loop body
LE: loop exit
PB: predicated region body
PF: predicated region fallthrough
CT: control target
= control target key end

     0   :  { %s606_s12 = smov 0   ;;  %s608_s13 = smov 0   ;;  %s673_s0 = inlined_call_operand.vmem [shape: bf16[32,128], index: 0, kind: input, shape index: {}]   ;;  %s674_s1 = inlined_call_operand.vmem [shape: bf16[128,128], index: 1, kind: input, shape index: {}]   ;;  %s675_s2 = inlined_call_operand.vmem [shape: f32[1,128], index: 2, kind: input, shape index: {}]   ;;  %s676_s3 = inlined_call_operand.vmem [shape: bf16[32,128], index: 3, kind: output, shape index: {}]  }
   0x1   :  { %s610_s14 = smov 0  }
   0x2 LB: > { %s25_s15 = sadd.s32 1, %s578_s13  ;;  %p470_p0 = scmp.ge.s32.totalorder %s582_s14, 1  ;;  %s582_s14 = sphi %s610_s14, %s13_s14   ;;  %s578_s13 = sphi %s608_s13, %s678_s13   ;;  %s574_s12 = sphi %s606_s12, %s677_s12  }
   0x3   : > { %p27_p1 = scmp.ge.s32.totalorder %s25_s15, 2  ;;  %p169_p2 = scmp.lt.s32.totalorder %s582_s14, 3 }
   0x5   : > { %s680_s15 = smov (%p27_p1, %s25_s15), 0  ;;  %p170_p3 = pnand %p470_p0, %p169_p2 }
   0x6   : > { %s471_s20 = sshll.u32 (!%p170_p3), %s574_s12, 1 }
   0x7   : > { %173 = sbr.rel (%p170_p3) target bundleno = 250 (0xfa), region = 32  ;;  %p204_p4 = scmp.lt.s32.totalorder (!%p170_p3), %s471_s20, 3 }
   0xc   : > { %v551_v0 = vld [vmem:[%s674_s1 + $0x38] sm:$0xff]   ;;  %v584_v1 = vmov 0.0   ;;  %v552_v2 = vld [vmem:[%s674_s1 + $0x30] sm:$0xff]   ;;  %vm585_vm0 = vmmov 0   ;;  %s682_s20 = smov (!%p204_p4, %s471_s20), 3  ;;  %v553_v3 = vld [vmem:[%s674_s1 + $0x28] sm:$0xff]  }
   0xd   : > { %505 = vmatprep.subr.bf16.mxu0 %v584_v1  ;;  %521 = vmatprep.mubr.msk.bf16.mxu0 %vm585_vm0, %v584_v1  ;;  %s472_s23 = sshll.u32 %s682_s20, 2  ;;  %v554_v4 = vld [vmem:[%s674_s1 + $0x20] sm:$0xff]   ;;  %v555_v5 = vld [vmem:[%s674_s1 + $0x18] sm:$0xff]   ;;  %v556_v6 = vld [vmem:[%s674_s1 + $0x10] sm:$0xff]  }
   0xe   : > { %506 = vmatpush3.bf16.msra.mxu0 %v551_v0  ;;  %s207_s26 = scalar_lea.vmem %s673_s0, %s472_s23  ;;  %v557_v7 = vld [vmem:[%s674_s1 + $0x8] sm:$0xff]   ;;  %v558_v8 = vld [vmem:[%s674_s1] sm:$0xff]   ;;  %s223_s17 = scalar_lea.vmem %s676_s3, %s472_s23 }
   0xf   : > { %507 = vmatprep.subr.bf16.mxu0 %v584_v1  ;;  %v559_v9 = vld [vmem:[%s207_s26] sm:$0xff]  }
  0x10   : > { %v475_v10 = vld [vmem:[%s675_s2] ss:$0 sm:$0xff] }
  0x12   : > { %508 = vmatpush3.bf16.msra.mxu0 %v552_v2 }
  0x13   : > { %509 = vmatprep.subr.bf16.mxu0 %v584_v1 }
  0x16   : > { %510 = vmatpush3.bf16.msra.mxu0 %v553_v3 }
  0x17   : > { %511 = vmatprep.subr.bf16.mxu0 %v584_v1 }
  0x1a   : > { %512 = vmatpush3.bf16.msra.mxu0 %v554_v4 }
  0x1b   : > { %513 = vmatprep.subr.bf16.mxu0 %v584_v1 }
  0x1e   : > { %514 = vmatpush3.bf16.msra.mxu0 %v555_v5 }
  0x1f   : > { %515 = vmatprep.subr.bf16.mxu0 %v584_v1 }
  0x22   : > { %516 = vmatpush3.bf16.msra.mxu0 %v556_v6 }
  0x23   : > { %517 = vmatprep.subr.bf16.mxu0 %v584_v1 }
  0x26   : > { %518 = vmatpush3.bf16.msra.mxu0 %v557_v7 }
  0x27   : > { %519 = vmatprep.subr.bf16.mxu0 %v584_v1 }
  0x2a   : > { %520 = vmatpush3.bf16.msra.mxu0 %v558_v8 }
  0x2d   : > { %522 = vmatmul.mubr.bf16.vlgmr.msra.gmra.mxu0 %v559_v9 }
  0xed   : > { %v339_v11 = vpop.f32.mrf.mxu0 }
  0xee   : > { %v340_v12 = vadd.f32 %v475_v10, %v339_v11 }
  0xef   : > { %v523_v13 = vpop.f32.mrf.mxu0 }
  0xf0   : > { %v348_v15 = vmul.f32 0.2, %v340_v12  ;;  %vm346_vm1 = vcmp.ge.f32.partialorder %v340_v12, 0.0 }
  0xf1   : > { %v342_v14 = vpop.f32.mrf.mxu0 }
  0xf2   : > { %v343_v16 = vadd.f32 %v475_v10, %v342_v14  ;;  %v350_v19 = vsel %vm346_vm1, %v340_v12, %v348_v15 }
  0xf3   : > { %v524_v17 = vpop.f32.mrf.mxu0 }
  0xf4   : > { %vm347_vm2 = vcmp.ge.f32.partialorder %v343_v16, 0.0  ;;  %v349_v18 = vmul.f32 0.2, %v343_v16 }
  0xf6   : > { %v351_v20 = vsel %vm347_vm2, %v343_v16, %v349_v18 }
  0xf7   : > { %v494_v21 = vpack.c.bf16 %v351_v20, %v350_v19 }
  0xf9   : > { %495 = vst [vmem:[%s223_s17] sm:$0xff] %v494_v21  }
  0xfa PF: > { %s13_s14 = sadd.s32 1, %s582_s14   ;;  %s677_s12 = smov %s578_s13 }
  0xfb   : > { %p10_p5 = scmp.ge.s32.totalorder %s13_s14, 4   ;;  %s678_s13 = smov %s680_s15 }
  0xfd   :  { %12 = sbr.rel (!%p10_p5) target bundleno = 2 (0x2), region = 68 }

// kernel: fader_network_forward.8
= control target key start
LH: loop header
LB: loop body
LE: loop exit
PB: predicated region body
PF: predicated region fallthrough
CT: control target
= control target key end

     0   :  { %s358_s1 = inlined_call_operand.vmem [shape: bf16[256,128], index: 1, kind: input, shape index: {}]   ;;  %s359_s0 = inlined_call_operand.vmem [shape: bf16[16,256], index: 0, kind: input, shape index: {}]   ;;  %s360_s2 = inlined_call_operand.vmem [shape: f32[1,128], index: 2, kind: input, shape index: {}]   ;;  %s361_s3 = inlined_call_operand.vmem [shape: f32[16,128], index: 3, kind: output, shape index: {}]  }
   0x1   :  { %v256_v0 = vld [vmem:[%s358_s1 + $0x78] sm:$0xff]   ;;  %v258_v2 = vld [vmem:[%s358_s1 + $0x70] sm:$0xff]   ;;  %v260_v4 = vld [vmem:[%s358_s1 + $0x68] sm:$0xff]  }
   0x2   :  { %v257_v1 = vld [vmem:[%s358_s1 + $0x38] sm:$0xff]   ;;  %234 = vmatprep.subr.bf16.mxu0 %v256_v0  ;;  %v259_v3 = vld [vmem:[%s358_s1 + $0x30] sm:$0xff]   ;;  %v261_v5 = vld [vmem:[%s358_s1 + $0x28] sm:$0xff]  }
   0x3   :  { %235 = vmatpush3.bf16.msra.mxu0 %v257_v1  ;;  %v262_v6 = vld [vmem:[%s358_s1 + $0x60] sm:$0xff]   ;;  %v264_v8 = vld [vmem:[%s358_s1 + $0x58] sm:$0xff]   ;;  %v266_v10 = vld [vmem:[%s358_s1 + $0x50] sm:$0xff]  }
   0x4   :  { %236 = vmatprep.subr.bf16.mxu0 %v258_v2  ;;  %v263_v7 = vld [vmem:[%s358_s1 + $0x20] sm:$0xff]   ;;  %v265_v9 = vld [vmem:[%s358_s1 + $0x18] sm:$0xff]   ;;  %v267_v12 = vld [vmem:[%s358_s1 + $0x10] sm:$0xff]  }
   0x5   :  { %v274_v11 = vld [vmem:[%s359_s0 + $0x4] ss:$8 sps:$4 sm:$0xff]   ;;  %v272_v17 = vld [vmem:[%s359_s0] ss:$8 sps:$4 sm:$0xff]  }
   0x6   :  { %194 = vmatprep.mubr.bf16.mxu0 %v274_v11  ;;  %v268_v13 = vld [vmem:[%s358_s1 + $0x48] sm:$0xff]   ;;  %v270_v15 = vld [vmem:[%s358_s1 + $0x40] sm:$0xff]  }
   0x7   :  { %237 = vmatpush3.bf16.msra.mxu0 %v259_v3  ;;  %v269_v14 = vld [vmem:[%s358_s1 + $0x8] sm:$0xff]   ;;  %v271_v16 = vld [vmem:[%s358_s1] sm:$0xff]  }
   0x8   :  { %238 = vmatprep.subr.bf16.mxu0 %v260_v4  ;;  %v215_v19 = vld [vmem:[%s360_s2] ss:$0 sm:$0xff] }
   0xb   :  { %239 = vmatpush3.bf16.msra.mxu0 %v261_v5 }
   0xc   :  { %240 = vmatprep.subr.bf16.mxu0 %v262_v6 }
   0xf   :  { %241 = vmatpush3.bf16.msra.mxu0 %v263_v7 }
  0x10   :  { %242 = vmatprep.subr.bf16.mxu0 %v264_v8 }
  0x13   :  { %243 = vmatpush3.bf16.msra.mxu0 %v265_v9 }
  0x14   :  { %244 = vmatprep.subr.bf16.mxu0 %v266_v10 }
  0x17   :  { %245 = vmatpush3.bf16.msra.mxu0 %v267_v12 }
  0x18   :  { %246 = vmatprep.subr.bf16.mxu0 %v268_v13 }
  0x1b   :  { %247 = vmatpush3.bf16.msra.mxu0 %v269_v14 }
  0x1c   :  { %248 = vmatprep.subr.bf16.mxu0 %v270_v15 }
  0x1f   :  { %249 = vmatpush3.bf16.msra.mxu0 %v271_v16 }
  0x22   :  { %195 = vmatmul.mubr.bf16.vlgmr.msra.gmra.mxu0 %v272_v17 }
  0xe2   :  { %v250_v18 = vpop.f32.mrf.mxu0 }
  0xe4   :  { %v251_v20 = vpop.f32.mrf.mxu0 }
  0xe5   :  { %v252_v21 = vadd.f32 %v251_v20, %v250_v18 }
  0xe6   :  { %v253_v22 = vpop.f32.mrf.mxu0 }
  0xe7   :  { %v197_v23 = vadd.f32 %v252_v21, %v215_v19 }
  0xe8   :  { %v254_v24 = vpop.f32.mrf.mxu0 }
  0xe9   :  { %vm203_vm0 = vcmp.ge.f32.partialorder %v197_v23, 0.0  ;;  %v205_v25 = vmul.f32 0.2, %v197_v23  ;;  %v255_v26 = vadd.f32 %v254_v24, %v253_v22 }
  0xeb   :  { %v207_v27 = vsel %vm203_vm0, %v197_v23, %v205_v25  ;;  %v200_v28 = vadd.f32 %v255_v26, %v215_v19 }
  0xec   :  { %209 = vst [vmem:[%s361_s3] sm:$0xff] %v207_v27 }
  0xed   :  { %vm204_vm1 = vcmp.ge.f32.partialorder %v200_v28, 0.0  ;;  %v206_v29 = vmul.f32 0.2, %v200_v28 }
  0xef   :  { %v208_v30 = vsel %vm204_vm1, %v200_v28, %v206_v29 }
  0xf0   :  { %210 = vst [vmem:[%s361_s3 + $0x8] sm:$0xff] %v208_v30 }

// kernel: fader_network_forward.9
= control target key start
LH: loop header
LB: loop body
LE: loop exit
PB: predicated region body
PF: predicated region fallthrough
CT: control target
= control target key end

     0   :  { %v450_v1 = vmov 0.0   ;;  %vm451_vm0 = vmmov 0   ;;  %s559_s1 = inlined_call_operand.vmem [shape: bf16[384,128], index: 1, kind: input, shape index: {}]   ;;  %s560_s0 = inlined_call_operand.vmem [shape: bf16[16,384], index: 0, kind: input, shape index: {}]   ;;  %s561_s2 = inlined_call_operand.vmem [shape: f32[1,128], index: 2, kind: input, shape index: {}]   ;;  %s562_s3 = inlined_call_operand.vmem [shape: bf16[16,128], index: 3, kind: output, shape index: {}]  }
   0x1   :  { %v422_v0 = vld [vmem:[%s559_s1 + $0x78] sm:$0xff]   ;;  %400 = vmatprep.subr.bf16.mxu1 %v450_v1  ;;  %416 = vmatprep.mubr.msk.bf16.mxu1 %vm451_vm0, %v450_v1  ;;  %v425_v4 = vld [vmem:[%s559_s1 + $0x70] sm:$0xff]   ;;  %v428_v7 = vld [vmem:[%s559_s1 + $0x68] sm:$0xff]  }
   0x2   :  { %v423_v2 = vld [vmem:[%s559_s1 + $0x38] sm:$0xff]   ;;  %369 = vmatprep.subr.bf16.mxu0 %v422_v0  ;;  %v426_v5 = vld [vmem:[%s559_s1 + $0x30] sm:$0xff]   ;;  %v429_v8 = vld [vmem:[%s559_s1 + $0x28] sm:$0xff]  }
   0x3   :  { %v424_v3 = vld [vmem:[%s559_s1 + $0xb8] sm:$0xff]   ;;  %370 = vmatpush3.bf16.msra.mxu0 %v423_v2  ;;  %v427_v6 = vld [vmem:[%s559_s1 + $0xb0] sm:$0xff]   ;;  %v430_v9 = vld [vmem:[%s559_s1 + $0xa8] sm:$0xff]  }
   0x4   :  { %401 = vmatpush3.bf16.msra.mxu1 %v424_v3  ;;  %371 = vmatprep.subr.bf16.mxu0 %v425_v4  ;;  %v431_v10 = vld [vmem:[%s559_s1 + $0x60] sm:$0xff]   ;;  %v434_v13 = vld [vmem:[%s559_s1 + $0x58] sm:$0xff]   ;;  %v437_v16 = vld [vmem:[%s559_s1 + $0x50] sm:$0xff]  }
   0x5   :  { %402 = vmatprep.subr.bf16.mxu1 %v450_v1  ;;  %v432_v11 = vld [vmem:[%s559_s1 + $0x20] sm:$0xff]   ;;  %v435_v14 = vld [vmem:[%s559_s1 + $0x18] sm:$0xff]   ;;  %v438_v17 = vld [vmem:[%s559_s1 + $0x10] sm:$0xff]  }
   0x6   :  { %v433_v12 = vld [vmem:[%s559_s1 + $0xa0] sm:$0xff]   ;;  %v436_v15 = vld [vmem:[%s559_s1 + $0x98] sm:$0xff]   ;;  %v439_v18 = vld [vmem:[%s559_s1 + $0x90] sm:$0xff]  }
   0x7   :  { %372 = vmatpush3.bf16.msra.mxu0 %v426_v5  ;;  %v440_v19 = vld [vmem:[%s559_s1 + $0x48] sm:$0xff]   ;;  %v443_v22 = vld [vmem:[%s559_s1 + $0x40] sm:$0xff]  }
   0x8   :  { %403 = vmatpush3.bf16.msra.mxu1 %v427_v6  ;;  %373 = vmatprep.subr.bf16.mxu0 %v428_v7  ;;  %v441_v20 = vld [vmem:[%s559_s1 + $0x8] sm:$0xff]   ;;  %v448_v23 = vld [vmem:[%s560_s0 + $0x4] ss:$12 sps:$4 sm:$0xff]   ;;  %v332_v30 = vld [vmem:[%s561_s2] ss:$0 sm:$0xff] }
   0x9   :  { %404 = vmatprep.subr.bf16.mxu1 %v450_v1  ;;  %v442_v21 = vld [vmem:[%s559_s1 + $0x88] sm:$0xff]   ;;  %v444_v24 = vld [vmem:[%s559_s1] sm:$0xff]   ;;  %266 = vmatprep.mubr.bf16.mxu0 %v448_v23 }
   0xa   :  { %v445_v25 = vld [vmem:[%s559_s1 + $0x80] sm:$0xff]   ;;  %v449_v27 = vld [vmem:[%s560_s0 + $0x8] ss:$12 sps:$4 sm:$0xff]  }
   0xb   :  { %374 = vmatpush3.bf16.msra.mxu0 %v429_v8  ;;  %v446_v26 = vld [vmem:[%s560_s0] ss:$12 sps:$4 sm:$0xff]  }
   0xc   :  { %405 = vmatpush3.bf16.msra.mxu1 %v430_v9  ;;  %375 = vmatprep.subr.bf16.mxu0 %v431_v10 }
   0xd   :  { %406 = vmatprep.subr.bf16.mxu1 %v450_v1 }
   0xf   :  { %376 = vmatpush3.bf16.msra.mxu0 %v432_v11 }
  0x10   :  { %407 = vmatpush3.bf16.msra.mxu1 %v433_v12  ;;  %377 = vmatprep.subr.bf16.mxu0 %v434_v13 }
  0x11   :  { %408 = vmatprep.subr.bf16.mxu1 %v450_v1 }
  0x13   :  { %378 = vmatpush3.bf16.msra.mxu0 %v435_v14 }
  0x14   :  { %409 = vmatpush3.bf16.msra.mxu1 %v436_v15  ;;  %379 = vmatprep.subr.bf16.mxu0 %v437_v16 }
  0x15   :  { %410 = vmatprep.subr.bf16.mxu1 %v450_v1 }
  0x17   :  { %380 = vmatpush3.bf16.msra.mxu0 %v438_v17 }
  0x18   :  { %411 = vmatpush3.bf16.msra.mxu1 %v439_v18  ;;  %381 = vmatprep.subr.bf16.mxu0 %v440_v19 }
  0x19   :  { %412 = vmatprep.subr.bf16.mxu1 %v450_v1 }
  0x1b   :  { %382 = vmatpush3.bf16.msra.mxu0 %v441_v20 }
  0x1c   :  { %413 = vmatpush3.bf16.msra.mxu1 %v442_v21  ;;  %383 = vmatprep.subr.bf16.mxu0 %v443_v22 }
  0x1d   :  { %414 = vmatprep.subr.bf16.mxu1 %v450_v1 }
  0x1f   :  { %384 = vmatpush3.bf16.msra.mxu0 %v444_v24 }
  0x20   :  { %415 = vmatpush3.bf16.msra.mxu1 %v445_v25 }
  0x22   :  { %267 = vmatmul.mubr.bf16.vlgmr.msra.gmra.mxu0 %v446_v26 }
  0x23   :  { %417 = vmatmul.mubr.bf16.vlgmr.msra.gmra.mxu1 %v449_v27 }
  0xe2   :  { %v385_v28 = vpop.f32.mrf.mxu0 }
  0xe3   :  { %v309_v29 = vpop.f32.mrf.mxu1 }
  0xe4   :  { %v386_v31 = vpop.f32.mrf.mxu0 }
  0xe5   :  { %v387_v32 = vadd.f32 %v386_v31, %v385_v28  ;;  %v418_v33 = vpop.f32.mrf.mxu1 }
  0xe6   :  { %v388_v34 = vpop.f32.mrf.mxu0 }
  0xe7   :  { %v269_v35 = vadd.f32 %v387_v32, %v332_v30  ;;  %v312_v36 = vpop.f32.mrf.mxu1 }
  0xe8   :  { %v389_v37 = vpop.f32.mrf.mxu0 }
  0xe9   :  { %v390_v38 = vadd.f32 %v389_v37, %v388_v34  ;;  %v419_v39 = vpop.f32.mrf.mxu1  ;;  %v310_v40 = vadd.f32 %v309_v29, %v269_v35 }
  0xeb   :  { %v272_v41 = vadd.f32 %v390_v38, %v332_v30  ;;  %v316_v43 = vmax.f32 %v310_v40, 0.0 }
  0xed   :  { %v313_v42 = vadd.f32 %v312_v36, %v272_v41 }
  0xef   :  { %v317_v44 = vmax.f32 %v313_v42, 0.0 }
  0xf1   :  { %v367_v45 = vpack.c.bf16 %v317_v44, %v316_v43 }
  0xf3   :  { %368 = vst [vmem:[%s562_s3] sm:$0xff] %v367_v45  }

// kernel: fader_network_forward.10
= control target key start
LH: loop header
LB: loop body
LE: loop exit
PB: predicated region body
PF: predicated region fallthrough
CT: control target
= control target key end

     0   :  { %s683_s12 = smov 0   ;;  %s685_s13 = smov 0   ;;  %s771_s0 = inlined_call_operand.vmem [shape: bf16[32,256], index: 0, kind: input, shape index: {}]   ;;  %s772_s1 = inlined_call_operand.vmem [shape: bf16[256,128], index: 1, kind: input, shape index: {}]   ;;  %s773_s2 = inlined_call_operand.vmem [shape: f32[1,128], index: 2, kind: input, shape index: {}]   ;;  %s774_s3 = inlined_call_operand.vmem [shape: bf16[32,128], index: 3, kind: output, shape index: {}]  }
   0x1   :  { %s687_s14 = smov 0  }
   0x2 LB: > { %s25_s15 = sadd.s32 1, %s657_s13  ;;  %p537_p0 = scmp.ge.s32.totalorder %s661_s14, 1  ;;  %s661_s14 = sphi %s687_s14, %s13_s14   ;;  %s657_s13 = sphi %s685_s13, %s776_s13   ;;  %s653_s12 = sphi %s683_s12, %s775_s12  }
   0x3   : > { %p27_p1 = scmp.ge.s32.totalorder %s25_s15, 2  ;;  %p170_p2 = scmp.lt.s32.totalorder %s661_s14, 3 }
   0x5   : > { %s778_s15 = smov (%p27_p1, %s25_s15), 0  ;;  %p171_p3 = pnand %p537_p0, %p170_p2 }
   0x6   : > { %s538_s18 = sshll.u32 (!%p171_p3), %s653_s12, 1 }
   0x7   : > { %174 = sbr.rel (%p171_p3) target bundleno = 253 (0xfd), region = 32  ;;  %p206_p4 = scmp.lt.s32.totalorder (!%p171_p3), %s538_s18, 3 }
   0xc   : > { %v620_v0 = vld [vmem:[%s772_s1 + $0x78] sm:$0xff]   ;;  %v622_v2 = vld [vmem:[%s772_s1 + $0x70] sm:$0xff]   ;;  %v624_v4 = vld [vmem:[%s772_s1 + $0x68] sm:$0xff]   ;;  %s780_s18 = smov (!%p206_p4, %s538_s18), 3 }
   0xd   : > { %v621_v1 = vld [vmem:[%s772_s1 + $0x38] sm:$0xff]   ;;  %574 = vmatprep.subr.bf16.mxu0 %v620_v0  ;;  %v623_v3 = vld [vmem:[%s772_s1 + $0x30] sm:$0xff]   ;;  %v625_v5 = vld [vmem:[%s772_s1 + $0x28] sm:$0xff]   ;;  %s566_s6 = sshll.u32 %s780_s18, 3  ;;  %s542_s5 = sshll.u32 %s780_s18, 2 }
   0xe   : > { %575 = vmatpush3.bf16.msra.mxu0 %v621_v1  ;;  %v626_v6 = vld [vmem:[%s772_s1 + $0x60] sm:$0xff]   ;;  %v628_v8 = vld [vmem:[%s772_s1 + $0x58] sm:$0xff]   ;;  %s210_s11 = scalar_lea.vmem %s771_s0, %s566_s6  ;;  %v630_v10 = vld [vmem:[%s772_s1 + $0x50] sm:$0xff]   ;;  %s226_s8 = scalar_lea.vmem %s774_s3, %s542_s5 }
   0xf   : > { %576 = vmatprep.subr.bf16.mxu0 %v622_v2  ;;  %v627_v7 = vld [vmem:[%s772_s1 + $0x20] sm:$0xff]   ;;  %v629_v9 = vld [vmem:[%s772_s1 + $0x18] sm:$0xff]   ;;  %v631_v12 = vld [vmem:[%s772_s1 + $0x10] sm:$0xff]  }
  0x10   : > { %v638_v11 = vld [vmem:[%s210_s11 + $0x4] ss:$8 sps:$4 sm:$0xff]   ;;  %v636_v17 = vld [vmem:[%s210_s11] ss:$8 sps:$4 sm:$0xff]  }
  0x11   : > { %408 = vmatprep.mubr.bf16.mxu0 %v638_v11  ;;  %v632_v13 = vld [vmem:[%s772_s1 + $0x48] sm:$0xff]   ;;  %v634_v15 = vld [vmem:[%s772_s1 + $0x40] sm:$0xff]  }
  0x12   : > { %577 = vmatpush3.bf16.msra.mxu0 %v623_v3  ;;  %v633_v14 = vld [vmem:[%s772_s1 + $0x8] sm:$0xff]   ;;  %v635_v16 = vld [vmem:[%s772_s1] sm:$0xff]  }
  0x13   : > { %578 = vmatprep.subr.bf16.mxu0 %v624_v4  ;;  %v543_v21 = vld [vmem:[%s773_s2] ss:$0 sm:$0xff] }
  0x16   : > { %579 = vmatpush3.bf16.msra.mxu0 %v625_v5 }
  0x17   : > { %580 = vmatprep.subr.bf16.mxu0 %v626_v6 }
  0x1a   : > { %581 = vmatpush3.bf16.msra.mxu0 %v627_v7 }
  0x1b   : > { %582 = vmatprep.subr.bf16.mxu0 %v628_v8 }
  0x1e   : > { %583 = vmatpush3.bf16.msra.mxu0 %v629_v9 }
  0x1f   : > { %584 = vmatprep.subr.bf16.mxu0 %v630_v10 }
  0x22   : > { %585 = vmatpush3.bf16.msra.mxu0 %v631_v12 }
  0x23   : > { %586 = vmatprep.subr.bf16.mxu0 %v632_v13 }
  0x26   : > { %587 = vmatpush3.bf16.msra.mxu0 %v633_v14 }
  0x27   : > { %588 = vmatprep.subr.bf16.mxu0 %v634_v15 }
  0x2a   : > { %589 = vmatpush3.bf16.msra.mxu0 %v635_v16 }
  0x2d   : > { %409 = vmatmul.mubr.bf16.vlgmr.msra.gmra.mxu0 %v636_v17 }
  0xed   : > { %v590_v18 = vpop.f32.mrf.mxu0 }
  0xef   : > { %v591_v19 = vpop.f32.mrf.mxu0 }
  0xf0   : > { %v592_v20 = vadd.f32 %v591_v19, %v590_v18 }
  0xf1   : > { %v593_v22 = vpop.f32.mrf.mxu0 }
  0xf2   : > { %v411_v24 = vadd.f32 %v592_v20, %v543_v21 }
  0xf3   : > { %v594_v23 = vpop.f32.mrf.mxu0 }
  0xf4   : > { %v595_v25 = vadd.f32 %v594_v23, %v593_v22  ;;  %v417_v27 = vmax.f32 %v411_v24, 0.0 }
  0xf6   : > { %v414_v26 = vadd.f32 %v595_v25, %v543_v21 }
  0xf8   : > { %v418_v28 = vmax.f32 %v414_v26, 0.0 }
  0xfa   : > { %v572_v29 = vpack.c.bf16 %v418_v28, %v417_v27 }
  0xfc   : > { %573 = vst [vmem:[%s226_s8] sm:$0xff] %v572_v29  }
  0xfd PF: > { %s13_s14 = sadd.s32 1, %s661_s14   ;;  %s775_s12 = smov %s657_s13 }
  0xfe   : > { %p10_p5 = scmp.ge.s32.totalorder %s13_s14, 4   ;;  %s776_s13 = smov %s778_s15 }
 0x100   :  { %12 = sbr.rel (!%p10_p5) target bundleno = 2 (0x2), region = 68 }

// kernel: fader_network_forward.11
= control target key start
LH: loop header
LB: loop body
LE: loop exit
PB: predicated region body
PF: predicated region fallthrough
CT: control target
= control target key end

     0   :  { %s803_s12 = smov 0   ;;  %s805_s13 = smov 0   ;;  %s904_s0 = inlined_call_operand.vmem [shape: bf16[128,256], index: 0, kind: input, shape index: {}]   ;;  %s905_s1 = inlined_call_operand.vmem [shape: bf16[256,128], index: 1, kind: input, shape index: {}]   ;;  %s906_s2 = inlined_call_operand.vmem [shape: f32[1,128], index: 2, kind: input, shape index: {}]   ;;  %s907_s3 = inlined_call_operand.vmem [shape: f32[128,128], index: 3, kind: output, shape index: {}]  }
   0x1   :  { %s807_s14 = smov 0  }
   0x2 LB: > { %s25_s15 = sadd.s32 1, %s777_s13  ;;  %p601_p0 = scmp.ge.s32.totalorder %s781_s14, 1  ;;  %s781_s14 = sphi %s807_s14, %s13_s14   ;;  %s777_s13 = sphi %s805_s13, %s909_s13   ;;  %s773_s12 = sphi %s803_s12, %s908_s12  }
   0x3   : > { %p27_p1 = scmp.ge.s32.totalorder %s25_s15, 2  ;;  %p170_p2 = scmp.lt.s32.totalorder %s781_s14, 3 }
   0x5   : > { %s911_s15 = smov (%p27_p1, %s25_s15), 0  ;;  %p171_p3 = pnand %p601_p0, %p170_p2 }
   0x6   : > { %s602_s18 = sshll.u32 (!%p171_p3), %s773_s12, 3 }
   0x7   : > { %174 = sbr.rel (%p171_p3) target bundleno = 272 (0x110), region = 32  ;;  %p206_p4 = scmp.lt.s32.totalorder (!%p171_p3), %s602_s18, 15 }
   0xc   : > { %v715_v0 = vld [vmem:[%s905_s1 + $0x78] sm:$0xff]   ;;  %v717_v2 = vld [vmem:[%s905_s1 + $0x70] sm:$0xff]   ;;  %v719_v4 = vld [vmem:[%s905_s1 + $0x68] sm:$0xff]   ;;  %s913_s18 = smov (!%p206_p4, %s602_s18), 15 }
   0xd   : > { %v716_v1 = vld [vmem:[%s905_s1 + $0x38] sm:$0xff]   ;;  %635 = vmatprep.subr.bf16.mxu0 %v715_v0  ;;  %675 = vmatprep.subr.bf16.mxu1 %v715_v0  ;;  %v718_v3 = vld [vmem:[%s905_s1 + $0x30] sm:$0xff]   ;;  %v720_v5 = vld [vmem:[%s905_s1 + $0x28] sm:$0xff]   ;;  %s634_s6 = sshll.u32 %s913_s18, 3 }
   0xe   : > { %636 = vmatpush3.bf16.msra.mxu0 %v716_v1  ;;  %683 = vmatpush3.bf16.msra.mxu1 %v716_v1  ;;  %v721_v6 = vld [vmem:[%s905_s1 + $0x60] sm:$0xff]   ;;  %v723_v8 = vld [vmem:[%s905_s1 + $0x58] sm:$0xff]   ;;  %s856_s11 = scalar_lea.vmem %s904_s0, %s634_s6  ;;  %v725_v10 = vld [vmem:[%s905_s1 + $0x50] sm:$0xff]   ;;  %s226_s8 = scalar_lea.vmem %s907_s3, %s634_s6 }
   0xf   : > { %637 = vmatprep.subr.bf16.mxu0 %v717_v2  ;;  %676 = vmatprep.subr.bf16.mxu1 %v717_v2  ;;  %v722_v7 = vld [vmem:[%s905_s1 + $0x20] sm:$0xff]   ;;  %v724_v9 = vld [vmem:[%s905_s1 + $0x18] sm:$0xff]   ;;  %v726_v13 = vld [vmem:[%s905_s1 + $0x10] sm:$0xff]  }
  0x10   : > { %v733_v11 = vld [vmem:[%s856_s11 + $0x4] ss:$8 sps:$4 sm:$0xff]   ;;  %v731_v18 = vld [vmem:[%s856_s11] ss:$8 sps:$4 sm:$0xff]   ;;  %v737_v20 = vld [vmem:[%s856_s11 + $0x14] ss:$8 sps:$4 sm:$0xff]  }
  0x11   : > { %v736_v12 = vld [vmem:[%s856_s11 + $0x24] ss:$8 sps:$4 sm:$0xff]   ;;  %444 = vmatprep.mubr.bf16.mxu0 %v733_v11  ;;  %v734_v19 = vld [vmem:[%s856_s11 + $0x20] ss:$8 sps:$4 sm:$0xff]   ;;  %v739_v21 = vld [vmem:[%s856_s11 + $0x34] ss:$8 sps:$4 sm:$0xff]  }
  0x12   : > { %638 = vmatpush3.bf16.msra.mxu0 %v718_v3  ;;  %684 = vmatpush3.bf16.msra.mxu1 %v718_v3  ;;  %v727_v14 = vld [vmem:[%s905_s1 + $0x48] sm:$0xff]   ;;  %v729_v16 = vld [vmem:[%s905_s1 + $0x40] sm:$0xff]   ;;  %v741_v22 = vld [vmem:[%s856_s11 + $0x10] ss:$8 sps:$4 sm:$0xff]  }
  0x13   : > { %639 = vmatprep.subr.bf16.mxu0 %v719_v4  ;;  %677 = vmatprep.subr.bf16.mxu1 %v719_v4  ;;  %v728_v15 = vld [vmem:[%s905_s1 + $0x8] sm:$0xff]   ;;  %v730_v17 = vld [vmem:[%s905_s1] sm:$0xff]   ;;  %v742_v23 = vld [vmem:[%s856_s11 + $0x30] ss:$8 sps:$4 sm:$0xff]  }
  0x14   : > { %460 = vmatprep.mubr.bf16.mxu1 %v736_v12  ;;  %v607_v26 = vld [vmem:[%s906_s2] ss:$0 sm:$0xff] }
  0x16   : > { %640 = vmatpush3.bf16.msra.mxu0 %v720_v5  ;;  %685 = vmatpush3.bf16.msra.mxu1 %v720_v5 }
  0x17   : > { %641 = vmatprep.subr.bf16.mxu0 %v721_v6  ;;  %678 = vmatprep.subr.bf16.mxu1 %v721_v6 }
  0x1a   : > { %642 = vmatpush3.bf16.msra.mxu0 %v722_v7  ;;  %686 = vmatpush3.bf16.msra.mxu1 %v722_v7 }
  0x1b   : > { %643 = vmatprep.subr.bf16.mxu0 %v723_v8  ;;  %679 = vmatprep.subr.bf16.mxu1 %v723_v8 }
  0x1e   : > { %644 = vmatpush3.bf16.msra.mxu0 %v724_v9  ;;  %687 = vmatpush3.bf16.msra.mxu1 %v724_v9 }
  0x1f   : > { %645 = vmatprep.subr.bf16.mxu0 %v725_v10  ;;  %680 = vmatprep.subr.bf16.mxu1 %v725_v10 }
  0x22   : > { %646 = vmatpush3.bf16.msra.mxu0 %v726_v13  ;;  %688 = vmatpush3.bf16.msra.mxu1 %v726_v13 }
  0x23   : > { %647 = vmatprep.subr.bf16.mxu0 %v727_v14  ;;  %681 = vmatprep.subr.bf16.mxu1 %v727_v14 }
  0x26   : > { %648 = vmatpush3.bf16.msra.mxu0 %v728_v15  ;;  %689 = vmatpush3.bf16.msra.mxu1 %v728_v15 }
  0x27   : > { %649 = vmatprep.subr.bf16.mxu0 %v729_v16  ;;  %682 = vmatprep.subr.bf16.mxu1 %v729_v16 }
  0x2a   : > { %650 = vmatpush3.bf16.msra.mxu0 %v730_v17  ;;  %690 = vmatpush3.bf16.msra.mxu1 %v730_v17 }
  0x2d   : > { %445 = vmatmul.mubr.bf16.vlgmr.msra.gmra.mxu0 %v731_v18  ;;  %461 = vmatmul.mubr.bf16.vlgmr.msra.gmra.mxu1 %v734_v19 }
  0x2e   : > { %452 = vmatprep.mubr.bf16.mxu0 %v737_v20  ;;  %468 = vmatprep.mubr.bf16.mxu1 %v739_v21 }
  0x35   : > { %453 = vmatmul.mubr.bf16.gmra.mxu0 %v741_v22  ;;  %469 = vmatmul.mubr.bf16.gmra.mxu1 %v742_v23 }
  0xed   : > { %v651_v24 = vpop.f32.mrf.mxu0  ;;  %v663_v25 = vpop.f32.mrf.mxu1 }
  0xef   : > { %v652_v27 = vpop.f32.mrf.mxu0  ;;  %v664_v28 = vpop.f32.mrf.mxu1 }
  0xf0   : > { %v653_v29 = vadd.f32 %v652_v27, %v651_v24  ;;  %v665_v30 = vadd.f32 %v664_v28, %v663_v25 }
  0xf1   : > { %v654_v31 = vpop.f32.mrf.mxu0  ;;  %v666_v32 = vpop.f32.mrf.mxu1 }
  0xf2   : > { %v447_v33 = vadd.f32 %v653_v29, %v607_v26  ;;  %v463_v34 = vadd.f32 %v665_v30, %v607_v26 }
  0xf3   : > { %v655_v35 = vpop.f32.mrf.mxu0  ;;  %v667_v36 = vpop.f32.mrf.mxu1 }
  0xf4   : > { %743 = vtanh.f32 %v447_v33  ;;  %v656_v37 = vadd.f32 %v655_v35, %v654_v31  ;;  %v668_v38 = vadd.f32 %v667_v36, %v666_v32 }
  0xf5   : > { %745 = vtanh.f32 %v463_v34  ;;  %v657_v39 = vpop.f32.mrf.mxu0  ;;  %v669_v40 = vpop.f32.mrf.mxu1 }
  0xf6   : > { %v450_v41 = vadd.f32 %v656_v37, %v607_v26  ;;  %v466_v42 = vadd.f32 %v668_v38, %v607_v26 }
  0xf7   : > { %v658_v43 = vpop.f32.mrf.mxu0  ;;  %v670_v44 = vpop.f32.mrf.mxu1 }
  0xf8   : > { %747 = vtanh.f32 %v450_v41  ;;  %v659_v45 = vadd.f32 %v658_v43, %v657_v39  ;;  %v671_v46 = vadd.f32 %v670_v44, %v669_v40 }
  0xf9   : > { %749 = vtanh.f32 %v466_v42  ;;  %v660_v47 = vpop.f32.mrf.mxu0  ;;  %v672_v48 = vpop.f32.mrf.mxu1 }
  0xfa   : > { %v455_v49 = vadd.f32 %v659_v45, %v607_v26  ;;  %v471_v50 = vadd.f32 %v671_v46, %v607_v26 }
  0xfb   : > { %v661_v51 = vpop.f32.mrf.mxu0  ;;  %v673_v52 = vpop.f32.mrf.mxu1 }
  0xfc   : > { %751 = vtanh.f32 %v455_v49  ;;  %v662_v53 = vadd.f32 %v661_v51, %v660_v47  ;;  %v674_v54 = vadd.f32 %v673_v52, %v672_v48 }
  0xfd   : > { %753 = vtanh.f32 %v471_v50 }
  0xfe   : > { %v458_v55 = vadd.f32 %v662_v53, %v607_v26  ;;  %v474_v56 = vadd.f32 %v674_v54, %v607_v26 }
 0x100   : > { %755 = vtanh.f32 %v458_v55 }
 0x101   : > { %v744_v57 = vpop.eup %743  ;;  %757 = vtanh.f32 %v474_v56 }
 0x102   : > { %v746_v58 = vpop.eup %745  ;;  %485 = vst [vmem:[%s226_s8] sm:$0xff] %v744_v57 }
 0x103   : > { %489 = vst [vmem:[%s226_s8 + $0x20] sm:$0xff] %v746_v58 }
 0x105   : > { %v748_v59 = vpop.eup %747 }
 0x106   : > { %v750_v60 = vpop.eup %749  ;;  %486 = vst [vmem:[%s226_s8 + $0x8] sm:$0xff] %v748_v59 }
 0x107   : > { %490 = vst [vmem:[%s226_s8 + $0x28] sm:$0xff] %v750_v60 }
 0x109   : > { %v752_v61 = vpop.eup %751 }
 0x10a   : > { %v754_v62 = vpop.eup %753  ;;  %487 = vst [vmem:[%s226_s8 + $0x10] sm:$0xff] %v752_v61 }
 0x10b   : > { %491 = vst [vmem:[%s226_s8 + $0x30] sm:$0xff] %v754_v62 }
 0x10d   : > { %v756_v63 = vpop.eup %755 }
 0x10e   : > { %v758_v0 = vpop.eup %757  ;;  %488 = vst [vmem:[%s226_s8 + $0x18] sm:$0xff] %v756_v63 }
 0x10f   : > { %492 = vst [vmem:[%s226_s8 + $0x38] sm:$0xff] %v758_v0 }
 0x110 PF: > { %s13_s14 = sadd.s32 1, %s781_s14   ;;  %s908_s12 = smov %s777_s13 }
 0x111   : > { %p10_p5 = scmp.ge.s32.totalorder %s13_s14, 4   ;;  %s909_s13 = smov %s911_s15 }
 0x113   :  { %12 = sbr.rel (!%p10_p5) target bundleno = 2 (0x2), region = 68 }

</bundles_post_ra>
